<compile_context>
chip_gen: v5e
topology: v5e:2x2
jax: 0.10.0
libtpu: 0.0.40
codegen_flags: <defaults>
</compile_context>

<pallas_src>
import jax
import jax.numpy as jnp
from jax.experimental import pallas as pl
from jax.experimental.pallas import tpu as pltpu

_LANE = 128


def _round_up(x, m):
    return ((x + m - 1) // m) * m


# ----------------------------------------------------------------------------
# Pallas kernel: tiled fused matmul + bias + ReLU  (conv hot path)
# ----------------------------------------------------------------------------
def _matmul_bias_relu_kernel(p_ref, w_ref, b_ref, o_ref, acc_ref):
    # p_ref: (tm, tk) bf16 patches, w_ref: (tk, tn) bf16 weights,
    # b_ref: (1, tn) f32 bias, o_ref: (tm, tn) bf16 out, acc_ref: f32 scratch.
    k = pl.program_id(2)

    @pl.when(k == 0)
    def _init():
        acc_ref[...] = jnp.zeros_like(acc_ref)

    acc_ref[...] += jnp.dot(p_ref[...], w_ref[...],
                            preferred_element_type=jnp.float32)

    @pl.when(k == pl.num_programs(2) - 1)
    def _finalize():
        o_ref[...] = jnp.maximum(acc_ref[...] + b_ref[...],
                                 0.0).astype(o_ref.dtype)


def _matmul_bias_relu(patches, w2d, bias2d, *, tm, tk, tn):
    Mp, Kp = patches.shape
    _, Np = w2d.shape
    grid = (Mp // tm, Np // tn, Kp // tk)

    cost = pl.CostEstimate(
        flops=2 * Mp * Kp * Np,
        transcendentals=0,
        bytes_accessed=(patches.size * patches.dtype.itemsize
                        + w2d.size * w2d.dtype.itemsize
                        + bias2d.size * bias2d.dtype.itemsize
                        + Mp * Np * 2),
    )

    return pl.pallas_call(
        _matmul_bias_relu_kernel,
        out_shape=jax.ShapeDtypeStruct((Mp, Np), jnp.bfloat16),
        grid_spec=pltpu.PrefetchScalarGridSpec(
            num_scalar_prefetch=0,
            grid=grid,
            in_specs=[
                pl.BlockSpec((tm, tk), lambda i, j, k: (i, k)),
                pl.BlockSpec((tk, tn), lambda i, j, k: (k, j)),
                pl.BlockSpec((1, tn), lambda i, j, k: (0, j)),
            ],
            out_specs=pl.BlockSpec((tm, tn), lambda i, j, k: (i, j)),
            scratch_shapes=[pltpu.VMEM((tm, tn), jnp.float32)],
        ),
        compiler_params=pltpu.CompilerParams(
            dimension_semantics=("parallel", "parallel", "arbitrary"),
            vmem_limit_bytes=32 * 1024 * 1024,
        ),
        cost_estimate=cost,
    )(patches, w2d, bias2d)


# ----------------------------------------------------------------------------
# Conv2d (stride, padding) via im2col + tiled Pallas matmul kernel. NHWC.
# ----------------------------------------------------------------------------
def _im2col_nhwc(x_nhwc, kh, kw, stride, pad):
    x = jnp.pad(x_nhwc, ((0, 0), (pad, pad), (pad, pad), (0, 0)))
    N, Hp, Wp, C = x.shape
    oh = (Hp - kh) // stride + 1
    ow = (Wp - kw) // stride + 1
    cols = []
    for i in range(kh):
        for j in range(kw):
            cols.append(x[:, i:i + stride * oh:stride,
                          j:j + stride * ow:stride, :])
    patches = jnp.concatenate(cols, axis=-1)            # (N, oh, ow, kh*kw*C)
    return patches.reshape(N * oh * ow, kh * kw * C), (N, oh, ow)


def conv2d_bias_relu_nhwc(x_nhwc, weight_oihw, bias, *, stride, pad):
    """weight: (Cout, Cin, KH, KW) as in PyTorch. NHWC in -> NHWC bf16 out."""
    Cout, Cin, KH, KW = weight_oihw.shape
    patches, (N, oh, ow) = _im2col_nhwc(x_nhwc.astype(jnp.bfloat16),
                                        KH, KW, stride, pad)
    M, K = patches.shape

    # match im2col ordering: (kh, kw, cin) -> flattened K
    w2d = jnp.transpose(weight_oihw, (2, 3, 1, 0)).reshape(KH * KW * Cin, Cout)
    w2d = w2d.astype(jnp.bfloat16)

    # Lane/MXU-friendly zero padding (numerically inert: padded K columns are
    # zero in both operands; padded output channels are sliced away).
    Kp = _round_up(K, _LANE)
    Np = _round_up(Cout, _LANE)
    tm = 512 if M >= 512 else _round_up(M, 16)   # bf16 sublane-pack friendly
    Mp = _round_up(M, tm)
    tk = next(c for c in (512, 256, 128) if Kp % c == 0)
    tn = _LANE

    patches_p = jnp.pad(patches, ((0, Mp - M), (0, Kp - K)))
    w_p = jnp.pad(w2d, ((0, Kp - K), (0, Np - Cout)))
    b_p = jnp.pad(bias.astype(jnp.float32), ((0, Np - Cout),)).reshape(1, Np)

    out_p = _matmul_bias_relu(patches_p, w_p, b_p, tm=tm, tk=tk, tn=tn)
    return out_p[:M, :Cout].reshape(N, oh, ow, Cout)     # NHWC, bf16


# ----------------------------------------------------------------------------
# Minimal concrete Backbone (honors the abstract Backbone contract)
# ----------------------------------------------------------------------------
@jax.jit
def _backbone_forward(x_nchw, w2, b2, w3, b3):
    # NCHW -> NHWC once; stay NHWC (channels on the lane dim) between layers.
    x = jnp.transpose(x_nchw, (0, 2, 3, 1))
    r2 = conv2d_bias_relu_nhwc(x, w2, b2, stride=2, pad=1)
    r3 = conv2d_bias_relu_nhwc(r2, w3, b3, stride=2, pad=1)
    # Back to NCHW f32 only at the public API boundary.
    res2 = jnp.transpose(r2, (0, 3, 1, 2)).astype(jnp.float32)
    res3 = jnp.transpose(r3, (0, 3, 1, 2)).astype(jnp.float32)
    return res2, res3


class ShapeSpec:
    def __init__(self, channels, stride):
        self.channels = channels
        self.stride = stride


class MinimalBackbonePallas:
    """Concrete realization of the abstract Backbone: returns
    dict[str -> feature map], NCHW, with per-feature channel/stride metadata."""

    def __init__(self, in_channels=4, key=jax.random.PRNGKey(0)):
        k1, k2, k3, k4 = jax.random.split(key, 4)
        c2, c3 = 8, 16
        # deterministic synthetic parameters (no checkpoint load)
        self.w2 = (jax.random.normal(k1, (c2, in_channels, 3, 3),
                                     dtype=jnp.float32) * 0.1)
        self.b2 = (jax.random.normal(k2, (c2,), dtype=jnp.float32) * 0.1)
        self.w3 = (jax.random.normal(k3, (c3, c2, 3, 3),
                                     dtype=jnp.float32) * 0.1)
        self.b3 = (jax.random.normal(k4, (c3,), dtype=jnp.float32) * 0.1)

        self._out_features = ["res2", "res3"]
        self._out_feature_channels = {"res2": c2, "res3": c3}
        self._out_feature_strides = {"res2": 2, "res3": 4}

    @property
    def size_divisibility(self):
        return 4

    def output_shape(self):
        return {
            name: ShapeSpec(channels=self._out_feature_channels[name],
                            stride=self._out_feature_strides[name])
            for name in self._out_features
        }

    def forward(self, x_nchw):
        res2, res3 = _backbone_forward(x_nchw, self.w2, self.b2,
                                       self.w3, self.b3)
        return {"res2": res2, "res3": res3}


# ----------------------------------------------------------------------------
# Reference (pure JAX/XLA, f32) for a correctness sanity check
# ----------------------------------------------------------------------------
def _conv_relu_ref(x_nchw, weight, bias, stride, pad):
    out = jax.lax.conv_general_dilated(
        x_nchw, weight, window_strides=(stride, stride),
        padding=((pad, pad), (pad, pad)),
        dimension_numbers=("NCHW", "OIHW", "NCHW"))
    return jnp.maximum(out + bias.reshape(1, -1, 1, 1), 0.0)


if __name__ == "__main__":
    key = jax.random.PRNGKey(0)
    x = jax.random.normal(key, (2, 4, 16, 16), dtype=jnp.float32)  # NCHW

    backbone = MinimalBackbonePallas(in_channels=4, key=jax.random.PRNGKey(0))
    feats = backbone.forward(x)
    jax.block_until_ready(feats)

    # sanity-check against the f32 XLA reference (kernel runs in bf16 with f32
    # accumulation, hence the moderate tolerance)
    ref2 = _conv_relu_ref(x, backbone.w2, backbone.b2, stride=2, pad=1)
    ref3 = _conv_relu_ref(ref2, backbone.w3, backbone.b3, stride=2, pad=1)
    assert feats["res2"].shape == (2, 8, 8, 8)
    assert feats["res3"].shape == (2, 16, 4, 4)
    assert jnp.allclose(feats["res2"], ref2, rtol=5e-2, atol=5e-2)
    assert jnp.allclose(feats["res3"], ref3, rtol=5e-2, atol=5e-2)

    print("KERNEL_OK")
</pallas_src>

<mosaic_0001>
module attributes {stable_mosaic.version = 11 : i64} {
  func.func @_matmul_bias_relu_kernel(%arg0: i32, %arg1: i32, %arg2: i32, %arg3: memref<128x128xbf16, #tpu.memory_space<vmem>>, %arg4: memref<128x128xbf16, #tpu.memory_space<vmem>>, %arg5: memref<1x128xf32, #tpu.memory_space<vmem>>, %arg6: memref<128x128xbf16, #tpu.memory_space<vmem>>, %arg7: memref<128x128xf32, #tpu.memory_space<vmem>>) attributes {dimension_semantics = [#tpu.dimension_semantics<parallel>, #tpu.dimension_semantics<parallel>, #tpu.dimension_semantics<arbitrary>], iteration_bounds = array<i64: 1, 1, 1>, scalar_prefetch = 0 : i64, scratch_operands = 1 : i64, tpu.core_type = #tpu.core_type<tc>, window_params = [{transform_indices = @transform_0, window_bounds = array<i64: 128, 128>}, {transform_indices = @transform_1, window_bounds = array<i64: 128, 128>}, {transform_indices = @transform_2, window_bounds = array<i64: 1, 128>}, {transform_indices = @transform_3, window_bounds = array<i64: 128, 128>}]} {
    %c0_i32 = arith.constant 0 : i32
    %0 = arith.cmpi eq, %arg2, %c0_i32 : i32
    %1 = arith.extui %0 : i1 to i32
    %c0_i32_0 = arith.constant 0 : i32
    %2 = arith.cmpi ne, %1, %c0_i32_0 : i32
    scf.if %2 {
      %cst_10 = arith.constant 0.000000e+00 : f32
      %12 = vector.broadcast %cst_10 : f32 to vector<128x128xf32>
      %c0_11 = arith.constant 0 : index
      %c0_12 = arith.constant 0 : index
      %13 = vector.load %arg7[%c0_11, %c0_12] : memref<128x128xf32, #tpu.memory_space<vmem>>, vector<128x128xf32>
      tpu.vector_store %arg7[%c0_11, %c0_12], %12 {strides = array<i32>} : memref<128x128xf32, #tpu.memory_space<vmem>>, vector<128x128xf32>,
    } else {
    }
    %c0 = arith.constant 0 : index
    %c0_1 = arith.constant 0 : index
    %3 = vector.load %arg7[%c0, %c0_1] : memref<128x128xf32, #tpu.memory_space<vmem>>, vector<128x128xf32>
    %c0_2 = arith.constant 0 : index
    %c0_3 = arith.constant 0 : index
    %4 = vector.load %arg3[%c0_2, %c0_3] : memref<128x128xbf16, #tpu.memory_space<vmem>>, vector<128x128xbf16>
    %c0_4 = arith.constant 0 : index
    %c0_5 = arith.constant 0 : index
    %5 = vector.load %arg4[%c0_4, %c0_5] : memref<128x128xbf16, #tpu.memory_space<vmem>>, vector<128x128xbf16>
    %cst = arith.constant dense<0.000000e+00> : vector<128x128xf32>
    %6 = tpu.matmul %4, %5, %cst {dimension_numbers = #tpu.dot_dimension_numbers<[1], [0], [0], [1], [0, 0, 1, 1], [], []>} : vector<128x128xbf16>, vector<128x128xbf16>, vector<128x128xf32> -> vector<128x128xf32>
    %7 = arith.addf %3, %6 : vector<128x128xf32>
    %c0_6 = arith.constant 0 : index
    %c0_7 = arith.constant 0 : index
    %8 = vector.load %arg7[%c0_6, %c0_7] : memref<128x128xf32, #tpu.memory_space<vmem>>, vector<128x128xf32>
    tpu.vector_store %arg7[%c0_6, %c0_7], %7 {strides = array<i32>} : memref<128x128xf32, #tpu.memory_space<vmem>>, vector<128x128xf32>,
    %c0_i32_8 = arith.constant 0 : i32
    %9 = arith.cmpi eq, %arg2, %c0_i32_8 : i32
    %10 = arith.extui %9 : i1 to i32
    %c0_i32_9 = arith.constant 0 : i32
    %11 = arith.cmpi ne, %10, %c0_i32_9 : i32
    scf.if %11 {
      %c0_10 = arith.constant 0 : index
      %c0_11 = arith.constant 0 : index
      %12 = vector.load %arg7[%c0_10, %c0_11] : memref<128x128xf32, #tpu.memory_space<vmem>>, vector<128x128xf32>
      %c0_12 = arith.constant 0 : index
      %c0_13 = arith.constant 0 : index
      %13 = vector.load %arg5[%c0_12, %c0_13] : memref<1x128xf32, #tpu.memory_space<vmem>>, vector<1x128xf32>
      %14 = vector.broadcast %13 : vector<1x128xf32> to vector<128x128xf32>
      %15 = arith.addf %12, %14 : vector<128x128xf32>
      %cst_14 = arith.constant 0.000000e+00 : f32
      %16 = vector.broadcast %cst_14 : f32 to vector<128x128xf32>
      %17 = arith.maximumf %15, %16 : vector<128x128xf32>
      %18 = arith.truncf %17 : vector<128x128xf32> to vector<128x128xbf16>
      %c0_15 = arith.constant 0 : index
      %c0_16 = arith.constant 0 : index
      %19 = vector.load %arg6[%c0_15, %c0_16] : memref<128x128xbf16, #tpu.memory_space<vmem>>, vector<128x128xbf16>
      tpu.vector_store %arg6[%c0_15, %c0_16], %18 {strides = array<i32>} : memref<128x128xbf16, #tpu.memory_space<vmem>>, vector<128x128xbf16>,
    } else {
    }
    return
  }
  func.func @transform_0(%arg0: i32, %arg1: i32, %arg2: i32) -> (i32, i32) {
    %c0_i32 = arith.constant 0 : i32
    return %arg0, %arg2 : i32, i32
  }
  func.func @transform_1(%arg0: i32, %arg1: i32, %arg2: i32) -> (i32, i32) {
    %c0_i32 = arith.constant 0 : i32
    return %arg2, %arg1 : i32, i32
  }
  func.func @transform_2(%arg0: i32, %arg1: i32, %arg2: i32) -> (i32, i32) {
    %c0_i32 = arith.constant 0 : i32
    %c0_i32_0 = arith.constant 0 : i32
    return %c0_i32, %arg1 : i32, i32
  }
  func.func @transform_3(%arg0: i32, %arg1: i32, %arg2: i32) -> (i32, i32) {
    %c0_i32 = arith.constant 0 : i32
    return %arg0, %arg1 : i32, i32
  }
}

module attributes {stable_mosaic.version = 11 : i64} {
  func.func @_matmul_bias_relu_kernel(%arg0: i32, %arg1: i32, %arg2: i32, %arg3: memref<32x128xbf16, #tpu.memory_space<vmem>>, %arg4: memref<128x128xbf16, #tpu.memory_space<vmem>>, %arg5: memref<1x128xf32, #tpu.memory_space<vmem>>, %arg6: memref<32x128xbf16, #tpu.memory_space<vmem>>, %arg7: memref<32x128xf32, #tpu.memory_space<vmem>>) attributes {dimension_semantics = [#tpu.dimension_semantics<parallel>, #tpu.dimension_semantics<parallel>, #tpu.dimension_semantics<arbitrary>], iteration_bounds = array<i64: 1, 1, 1>, scalar_prefetch = 0 : i64, scratch_operands = 1 : i64, tpu.core_type = #tpu.core_type<tc>, window_params = [{transform_indices = @transform_0, window_bounds = array<i64: 32, 128>}, {transform_indices = @transform_1, window_bounds = array<i64: 128, 128>}, {transform_indices = @transform_2, window_bounds = array<i64: 1, 128>}, {transform_indices = @transform_3, window_bounds = array<i64: 32, 128>}]} {
    %c0_i32 = arith.constant 0 : i32
    %0 = arith.cmpi eq, %arg2, %c0_i32 : i32
    %1 = arith.extui %0 : i1 to i32
    %c0_i32_0 = arith.constant 0 : i32
    %2 = arith.cmpi ne, %1, %c0_i32_0 : i32
    scf.if %2 {
      %cst_10 = arith.constant 0.000000e+00 : f32
      %12 = vector.broadcast %cst_10 : f32 to vector<32x128xf32>
      %c0_11 = arith.constant 0 : index
      %c0_12 = arith.constant 0 : index
      %13 = vector.load %arg7[%c0_11, %c0_12] : memref<32x128xf32, #tpu.memory_space<vmem>>, vector<32x128xf32>
      tpu.vector_store %arg7[%c0_11, %c0_12], %12 {strides = array<i32>} : memref<32x128xf32, #tpu.memory_space<vmem>>, vector<32x128xf32>,
    } else {
    }
    %c0 = arith.constant 0 : index
    %c0_1 = arith.constant 0 : index
    %3 = vector.load %arg7[%c0, %c0_1] : memref<32x128xf32, #tpu.memory_space<vmem>>, vector<32x128xf32>
    %c0_2 = arith.constant 0 : index
    %c0_3 = arith.constant 0 : index
    %4 = vector.load %arg3[%c0_2, %c0_3] : memref<32x128xbf16, #tpu.memory_space<vmem>>, vector<32x128xbf16>
    %c0_4 = arith.constant 0 : index
    %c0_5 = arith.constant 0 : index
    %5 = vector.load %arg4[%c0_4, %c0_5] : memref<128x128xbf16, #tpu.memory_space<vmem>>, vector<128x128xbf16>
    %cst = arith.constant dense<0.000000e+00> : vector<32x128xf32>
    %6 = tpu.matmul %4, %5, %cst {dimension_numbers = #tpu.dot_dimension_numbers<[1], [0], [0], [1], [0, 0, 1, 1], [], []>} : vector<32x128xbf16>, vector<128x128xbf16>, vector<32x128xf32> -> vector<32x128xf32>
    %7 = arith.addf %3, %6 : vector<32x128xf32>
    %c0_6 = arith.constant 0 : index
    %c0_7 = arith.constant 0 : index
    %8 = vector.load %arg7[%c0_6, %c0_7] : memref<32x128xf32, #tpu.memory_space<vmem>>, vector<32x128xf32>
    tpu.vector_store %arg7[%c0_6, %c0_7], %7 {strides = array<i32>} : memref<32x128xf32, #tpu.memory_space<vmem>>, vector<32x128xf32>,
    %c0_i32_8 = arith.constant 0 : i32
    %9 = arith.cmpi eq, %arg2, %c0_i32_8 : i32
    %10 = arith.extui %9 : i1 to i32
    %c0_i32_9 = arith.constant 0 : i32
    %11 = arith.cmpi ne, %10, %c0_i32_9 : i32
    scf.if %11 {
      %c0_10 = arith.constant 0 : index
      %c0_11 = arith.constant 0 : index
      %12 = vector.load %arg7[%c0_10, %c0_11] : memref<32x128xf32, #tpu.memory_space<vmem>>, vector<32x128xf32>
      %c0_12 = arith.constant 0 : index
      %c0_13 = arith.constant 0 : index
      %13 = vector.load %arg5[%c0_12, %c0_13] : memref<1x128xf32, #tpu.memory_space<vmem>>, vector<1x128xf32>
      %14 = vector.broadcast %13 : vector<1x128xf32> to vector<32x128xf32>
      %15 = arith.addf %12, %14 : vector<32x128xf32>
      %cst_14 = arith.constant 0.000000e+00 : f32
      %16 = vector.broadcast %cst_14 : f32 to vector<32x128xf32>
      %17 = arith.maximumf %15, %16 : vector<32x128xf32>
      %18 = arith.truncf %17 : vector<32x128xf32> to vector<32x128xbf16>
      %c0_15 = arith.constant 0 : index
      %c0_16 = arith.constant 0 : index
      %19 = vector.load %arg6[%c0_15, %c0_16] : memref<32x128xbf16, #tpu.memory_space<vmem>>, vector<32x128xbf16>
      tpu.vector_store %arg6[%c0_15, %c0_16], %18 {strides = array<i32>} : memref<32x128xbf16, #tpu.memory_space<vmem>>, vector<32x128xbf16>,
    } else {
    }
    return
  }
  func.func @transform_0(%arg0: i32, %arg1: i32, %arg2: i32) -> (i32, i32) {
    %c0_i32 = arith.constant 0 : i32
    return %arg0, %arg2 : i32, i32
  }
  func.func @transform_1(%arg0: i32, %arg1: i32, %arg2: i32) -> (i32, i32) {
    %c0_i32 = arith.constant 0 : i32
    return %arg2, %arg1 : i32, i32
  }
  func.func @transform_2(%arg0: i32, %arg1: i32, %arg2: i32) -> (i32, i32) {
    %c0_i32 = arith.constant 0 : i32
    %c0_i32_0 = arith.constant 0 : i32
    return %c0_i32, %arg1 : i32, i32
  }
  func.func @transform_3(%arg0: i32, %arg1: i32, %arg2: i32) -> (i32, i32) {
    %c0_i32 = arith.constant 0 : i32
    return %arg0, %arg1 : i32, i32
  }
}

</mosaic_0001>

<bundles_post_ra>
// kernel: _backbone_forward.2
= control target key start
LH: loop header
LB: loop body
LE: loop exit
PB: predicated region body
PF: predicated region fallthrough
CT: control target
= control target key end

     0   :  { %s597_s1 = inlined_call_operand.vmem [shape: bf16[128,128], index: 1, kind: input, shape index: {}]   ;;  %s598_s2 = inlined_call_operand.vmem [shape: f32[1,128], index: 2, kind: input, shape index: {}]   ;;  %s599_s0 = inlined_call_operand.vmem [shape: bf16[128,128], index: 0, kind: input, shape index: {}]   ;;  %s600_s3 = inlined_call_operand.vmem [shape: bf16[128,128], index: 3, kind: output, shape index: {}]  }
   0x1   :  { %v429_v0 = vld [vmem:[%s597_s1 + $0x38] sm:$0xff]  ;;  %v428_v1 = vld [vmem:[%s597_s1 + $0x30] sm:$0xff]  ;;  %v427_v2 = vld [vmem:[%s597_s1 + $0x28] sm:$0xff] }
   0x2   :  { %178 = vmatpush.bf16.msra.mxu0 %v429_v0  ;;  %477 = vmatpush.bf16.msra.mxu1 %v429_v0  ;;  %v426_v3 = vld [vmem:[%s597_s1 + $0x20] sm:$0xff]  ;;  %v425_v4 = vld [vmem:[%s597_s1 + $0x18] sm:$0xff]  ;;  %v424_v5 = vld [vmem:[%s597_s1 + $0x10] sm:$0xff] }
   0x3   :  { %478 = vmatpush.bf16.msra.mxu2 %v429_v0  ;;  %479 = vmatpush.bf16.msra.mxu3 %v429_v0  ;;  %v423_v6 = vld [vmem:[%s597_s1 + $0x8] sm:$0xff]  ;;  %v422_v7 = vld [vmem:[%s597_s1] sm:$0xff]  ;;  %v416_v9 = vld [vmem:[%s599_s0 + $0x10] sm:$0xff] }
   0x4   :  { %v414_v8 = vld [vmem:[%s599_s0] sm:$0xff]  ;;  %v420_v11 = vld [vmem:[%s599_s0 + $0x30] sm:$0xff]  ;;  %v415_v12 = vld [vmem:[%s599_s0 + $0x8] sm:$0xff] }
   0x5   :  { %v418_v10 = vld [vmem:[%s599_s0 + $0x20] sm:$0xff]  ;;  %v417_v13 = vld [vmem:[%s599_s0 + $0x18] sm:$0xff]  ;;  %v419_v14 = vld [vmem:[%s599_s0 + $0x28] sm:$0xff] }
   0x6   :  { %179 = vmatpush.bf16.msra.mxu0 %v428_v1  ;;  %480 = vmatpush.bf16.msra.mxu1 %v428_v1  ;;  %v421_v15 = vld [vmem:[%s599_s0 + $0x38] sm:$0xff]  ;;  %v501_v18 = vld [vmem:[%s598_s2] ss:$0 sm:$0xff] }
   0x7   :  { %481 = vmatpush.bf16.msra.mxu2 %v428_v1  ;;  %482 = vmatpush.bf16.msra.mxu3 %v428_v1 }
   0xa   :  { %180 = vmatpush.bf16.msra.mxu0 %v427_v2  ;;  %483 = vmatpush.bf16.msra.mxu1 %v427_v2 }
   0xb   :  { %484 = vmatpush.bf16.msra.mxu2 %v427_v2  ;;  %485 = vmatpush.bf16.msra.mxu3 %v427_v2 }
   0xe   :  { %181 = vmatpush.bf16.msra.mxu0 %v426_v3  ;;  %486 = vmatpush.bf16.msra.mxu1 %v426_v3 }
   0xf   :  { %487 = vmatpush.bf16.msra.mxu2 %v426_v3  ;;  %488 = vmatpush.bf16.msra.mxu3 %v426_v3 }
  0x12   :  { %182 = vmatpush.bf16.msra.mxu0 %v425_v4  ;;  %489 = vmatpush.bf16.msra.mxu1 %v425_v4 }
  0x13   :  { %490 = vmatpush.bf16.msra.mxu2 %v425_v4  ;;  %491 = vmatpush.bf16.msra.mxu3 %v425_v4 }
  0x16   :  { %183 = vmatpush.bf16.msra.mxu0 %v424_v5  ;;  %492 = vmatpush.bf16.msra.mxu1 %v424_v5 }
  0x17   :  { %493 = vmatpush.bf16.msra.mxu2 %v424_v5  ;;  %494 = vmatpush.bf16.msra.mxu3 %v424_v5 }
  0x1a   :  { %184 = vmatpush.bf16.msra.mxu0 %v423_v6  ;;  %495 = vmatpush.bf16.msra.mxu1 %v423_v6 }
  0x1b   :  { %496 = vmatpush.bf16.msra.mxu2 %v423_v6  ;;  %497 = vmatpush.bf16.msra.mxu3 %v423_v6 }
  0x1e   :  { %185 = vmatpush.bf16.msra.mxu0 %v422_v7  ;;  %498 = vmatpush.bf16.msra.mxu1 %v422_v7 }
  0x1f   :  { %499 = vmatpush.bf16.msra.mxu2 %v422_v7  ;;  %500 = vmatpush.bf16.msra.mxu3 %v422_v7 }
  0x21   :  { %186 = vmatmul.bf16.vlgmr.msra.gmra.mxu0 %v414_v8  ;;  %196 = vmatmul.bf16.vlgmr.msra.gmra.mxu1 %v416_v9 }
  0x22   :  { %206 = vmatmul.bf16.vlgmr.msra.gmra.mxu2 %v418_v10  ;;  %216 = vmatmul.bf16.vlgmr.msra.gmra.mxu3 %v420_v11 }
  0x31   :  { %191 = vmatmul.bf16.gmra.mxu0 %v415_v12  ;;  %201 = vmatmul.bf16.gmra.mxu1 %v417_v13 }
  0x32   :  { %211 = vmatmul.bf16.gmra.mxu2 %v419_v14  ;;  %221 = vmatmul.bf16.gmra.mxu3 %v421_v15 }
  0x9e   :  { %v187_v16 = vpop.f32.mrf.mxu0  ;;  %v197_v17 = vpop.f32.mrf.mxu1 }
  0x9f   :  { %v282_v19 = vadd.f32 %v501_v18, %v187_v16  ;;  %v286_v20 = vadd.f32 %v501_v18, %v197_v17 }
  0xa1   :  { %v298_v27 = vmax.f32 %v282_v19, 0.0  ;;  %v302_v28 = vmax.f32 %v286_v20, 0.0 }
  0xa5   :  { %v207_v21 = vpop.f32.mrf.mxu2  ;;  %v217_v22 = vpop.f32.mrf.mxu3 }
  0xa6   :  { %v189_v23 = vpop.f32.mrf.mxu0  ;;  %v199_v24 = vpop.f32.mrf.mxu1  ;;  %v290_v33 = vadd.f32 %v501_v18, %v207_v21  ;;  %v294_v34 = vadd.f32 %v501_v18, %v217_v22 }
  0xa7   :  { %v283_v25 = vadd.f32 %v501_v18, %v189_v23  ;;  %v287_v26 = vadd.f32 %v501_v18, %v199_v24 }
  0xa8   :  { %v306_v41 = vmax.f32 %v290_v33, 0.0  ;;  %v310_v42 = vmax.f32 %v294_v34, 0.0 }
  0xa9   :  { %v299_v29 = vmax.f32 %v283_v25, 0.0  ;;  %v303_v30 = vmax.f32 %v287_v26, 0.0 }
  0xab   :  { %v433_v31 = vpack.c.bf16 %v299_v29, %v298_v27  ;;  %v443_v32 = vpack.c.bf16 %v303_v30, %v302_v28 }
  0xad   :  { %434 = vst [vmem:[%s600_s3] sm:$0xff] %v433_v31   ;;  %v209_v35 = vpop.f32.mrf.mxu2  ;;  %v219_v36 = vpop.f32.mrf.mxu3 }
  0xae   :  { %471 = vst [vmem:[%s600_s3 + $0x10] sm:$0xff] %v443_v32   ;;  %v291_v37 = vadd.f32 %v501_v18, %v209_v35  ;;  %v295_v38 = vadd.f32 %v501_v18, %v219_v36  ;;  %v192_v39 = vpop.f32.mrf.mxu0  ;;  %v202_v40 = vpop.f32.mrf.mxu1 }
  0xaf   :  { %v284_v47 = vadd.f32 %v501_v18, %v192_v39  ;;  %v288_v48 = vadd.f32 %v501_v18, %v202_v40 }
  0xb0   :  { %v307_v43 = vmax.f32 %v291_v37, 0.0  ;;  %v311_v44 = vmax.f32 %v295_v38, 0.0 }
  0xb1   :  { %v300_v55 = vmax.f32 %v284_v47, 0.0  ;;  %v304_v56 = vmax.f32 %v288_v48, 0.0 }
  0xb2   :  { %v453_v45 = vpack.c.bf16 %v307_v43, %v306_v41  ;;  %v463_v46 = vpack.c.bf16 %v311_v44, %v310_v42 }
  0xb4   :  { %473 = vst [vmem:[%s600_s3 + $0x20] sm:$0xff] %v453_v45  }
  0xb5   :  { %475 = vst [vmem:[%s600_s3 + $0x30] sm:$0xff] %v463_v46   ;;  %v212_v49 = vpop.f32.mrf.mxu2  ;;  %v222_v50 = vpop.f32.mrf.mxu3 }
  0xb6   :  { %v194_v51 = vpop.f32.mrf.mxu0  ;;  %v204_v52 = vpop.f32.mrf.mxu1  ;;  %v292_v61 = vadd.f32 %v501_v18, %v212_v49  ;;  %v296_v62 = vadd.f32 %v501_v18, %v222_v50 }
  0xb7   :  { %v285_v53 = vadd.f32 %v501_v18, %v194_v51  ;;  %v289_v54 = vadd.f32 %v501_v18, %v204_v52 }
  0xb8   :  { %v308_v3 = vmax.f32 %v292_v61, 0.0  ;;  %v312_v4 = vmax.f32 %v296_v62, 0.0 }
  0xb9   :  { %v301_v57 = vmax.f32 %v285_v53, 0.0  ;;  %v305_v58 = vmax.f32 %v289_v54, 0.0 }
  0xbb   :  { %v438_v59 = vpack.c.bf16 %v301_v57, %v300_v55  ;;  %v448_v60 = vpack.c.bf16 %v305_v58, %v304_v56 }
  0xbd   :  { %470 = vst [vmem:[%s600_s3 + $0x8] sm:$0xff] %v438_v59   ;;  %v214_v63 = vpop.f32.mrf.mxu2  ;;  %v224_v0 = vpop.f32.mrf.mxu3 }
  0xbe   :  { %472 = vst [vmem:[%s600_s3 + $0x18] sm:$0xff] %v448_v60   ;;  %v293_v1 = vadd.f32 %v501_v18, %v214_v63  ;;  %v297_v2 = vadd.f32 %v501_v18, %v224_v0 }
  0xc0   :  { %v309_v5 = vmax.f32 %v293_v1, 0.0  ;;  %v313_v6 = vmax.f32 %v297_v2, 0.0 }
  0xc2   :  { %v458_v7 = vpack.c.bf16 %v309_v5, %v308_v3  ;;  %v468_v8 = vpack.c.bf16 %v313_v6, %v312_v4 }
  0xc4   :  { %474 = vst [vmem:[%s600_s3 + $0x28] sm:$0xff] %v458_v7  }
  0xc5   :  { %476 = vst [vmem:[%s600_s3 + $0x38] sm:$0xff] %v468_v8  }

// kernel: _backbone_forward.3
= control target key start
LH: loop header
LB: loop body
LE: loop exit
PB: predicated region body
PF: predicated region fallthrough
CT: control target
= control target key end

     0   :  { %s293_s1 = inlined_call_operand.vmem [shape: bf16[128,128], index: 1, kind: input, shape index: {}]   ;;  %s294_s2 = inlined_call_operand.vmem [shape: f32[1,128], index: 2, kind: input, shape index: {}]   ;;  %s295_s0 = inlined_call_operand.vmem [shape: bf16[32,128], index: 0, kind: input, shape index: {}]   ;;  %s296_s3 = inlined_call_operand.vmem [shape: bf16[32,128], index: 3, kind: output, shape index: {}]  }
   0x1   :  { %v213_v0 = vld [vmem:[%s293_s1 + $0x38] sm:$0xff]  ;;  %v212_v1 = vld [vmem:[%s293_s1 + $0x30] sm:$0xff]  ;;  %v211_v2 = vld [vmem:[%s293_s1 + $0x28] sm:$0xff] }
   0x2   :  { %106 = vmatpush.bf16.msra.mxu0 %v213_v0  ;;  %225 = vmatpush.bf16.msra.mxu1 %v213_v0  ;;  %v210_v3 = vld [vmem:[%s293_s1 + $0x20] sm:$0xff]  ;;  %v209_v4 = vld [vmem:[%s293_s1 + $0x18] sm:$0xff]  ;;  %v208_v5 = vld [vmem:[%s293_s1 + $0x10] sm:$0xff] }
   0x3   :  { %v207_v6 = vld [vmem:[%s293_s1 + $0x8] sm:$0xff]  ;;  %v206_v7 = vld [vmem:[%s293_s1] sm:$0xff] }
   0x4   :  { %v204_v8 = vld [vmem:[%s295_s0] sm:$0xff]  ;;  %v205_v9 = vld [vmem:[%s295_s0 + $0x8] sm:$0xff] }
   0x5   :  { %v233_v12 = vld [vmem:[%s294_s2] ss:$0 sm:$0xff] }
   0x6   :  { %107 = vmatpush.bf16.msra.mxu0 %v212_v1  ;;  %226 = vmatpush.bf16.msra.mxu1 %v212_v1 }
   0xa   :  { %108 = vmatpush.bf16.msra.mxu0 %v211_v2  ;;  %227 = vmatpush.bf16.msra.mxu1 %v211_v2 }
   0xe   :  { %109 = vmatpush.bf16.msra.mxu0 %v210_v3  ;;  %228 = vmatpush.bf16.msra.mxu1 %v210_v3 }
  0x12   :  { %110 = vmatpush.bf16.msra.mxu0 %v209_v4  ;;  %229 = vmatpush.bf16.msra.mxu1 %v209_v4 }
  0x16   :  { %111 = vmatpush.bf16.msra.mxu0 %v208_v5  ;;  %230 = vmatpush.bf16.msra.mxu1 %v208_v5 }
  0x1a   :  { %112 = vmatpush.bf16.msra.mxu0 %v207_v6  ;;  %231 = vmatpush.bf16.msra.mxu1 %v207_v6 }
  0x1e   :  { %113 = vmatpush.bf16.msra.mxu0 %v206_v7  ;;  %232 = vmatpush.bf16.msra.mxu1 %v206_v7 }
  0x21   :  { %114 = vmatmul.bf16.vlgmr.msra.gmra.mxu0 %v204_v8  ;;  %119 = vmatmul.bf16.vlgmr.msra.gmra.mxu1 %v205_v9 }
  0x9e   :  { %v115_v10 = vpop.f32.mrf.mxu0  ;;  %v120_v11 = vpop.f32.mrf.mxu1 }
  0x9f   :  { %v144_v13 = vadd.f32 %v233_v12, %v115_v10  ;;  %v146_v14 = vadd.f32 %v233_v12, %v120_v11 }
  0xa1   :  { %v148_v19 = vmax.f32 %v144_v13, 0.0  ;;  %v150_v20 = vmax.f32 %v146_v14, 0.0 }
  0xa6   :  { %v117_v15 = vpop.f32.mrf.mxu0  ;;  %v122_v16 = vpop.f32.mrf.mxu1 }
  0xa7   :  { %v145_v17 = vadd.f32 %v233_v12, %v117_v15  ;;  %v147_v18 = vadd.f32 %v233_v12, %v122_v16 }
  0xa9   :  { %v149_v21 = vmax.f32 %v145_v17, 0.0  ;;  %v151_v22 = vmax.f32 %v147_v18, 0.0 }
  0xab   :  { %v217_v23 = vpack.c.bf16 %v149_v21, %v148_v19  ;;  %v222_v24 = vpack.c.bf16 %v151_v22, %v150_v20 }
  0xad   :  { %218 = vst [vmem:[%s296_s3] sm:$0xff] %v217_v23  }
  0xae   :  { %224 = vst [vmem:[%s296_s3 + $0x8] sm:$0xff] %v222_v24  }

</bundles_post_ra>
